<compile_context>
chip_gen: v6e
topology: v6e:2x2x1
jax: 0.10.0
libtpu: 0.0.40
codegen_flags: <defaults>
</compile_context>

<pallas_src>
import functools

import jax
import jax.numpy as jnp
from jax.experimental import pallas as pl
from jax.experimental.pallas import tpu as pltpu

LAMBDA = 1.0        # SART relaxation factor
EPS = 1e-6


def _round_up(x, m):
    return ((x + m - 1) // m) * m


def _sart_kernel(x_ref, p_ref, a_ref, invr_ref, invc_ref, o_ref, acc_ref):
    """One M-tile of the fused SART update.

    x_ref:    (B, N)       resident f32 image (same block across the grid)
    p_ref:    (B, tile_M)  sinogram tile, f32
    a_ref:    (tile_M, N)  system-matrix tile, bf16
    invr_ref: (1, tile_M)  precomputed 1 / (A @ 1 + eps) tile, f32
    invc_ref: (1, N)       precomputed 1 / (1 @ A + eps), f32 (resident)
    o_ref:    (B, N)       output image (resident, written on last step)
    acc_ref:  (B, N)       f32 backprojection accumulator (VMEM scratch)
    """
    k = pl.program_id(0)

    @pl.when(k == 0)
    def _():
        acc_ref[...] = jnp.zeros_like(acc_ref)

    x = x_ref[...]                                   # (B, N) f32
    a = a_ref[...]                                   # (tile_M, N) bf16

    # Forward projection for this ray tile: p_hat[b, m] = sum_n x[b,n]*A[m,n]
    p_hat = jax.lax.dot_general(
        x.astype(jnp.bfloat16), a, (((1,), (1,)), ((), ())),
        preferred_element_type=jnp.float32)          # (B, tile_M)

    # Normalized residual in sinogram space (row normalizer precomputed).
    resid = (p_ref[...] - p_hat) * invr_ref[...]     # (B, tile_M) f32

    # Backprojection accumulate: bp[b, n] += sum_m resid[b,m] * A[m,n]
    acc_ref[...] += jnp.dot(resid.astype(jnp.bfloat16), a,
                            preferred_element_type=jnp.float32)

    @pl.when(k == pl.num_programs(0) - 1)
    def _():
        o_ref[...] = (x + LAMBDA * acc_ref[...] * invc_ref[...]
                      ).astype(o_ref.dtype)


@functools.partial(jax.jit, static_argnames=("tile_m",))
def _sart_pallas(x, p, a_bf16, inv_row, inv_col, *, tile_m):
    B, n_pad = x.shape
    _, m_pad = p.shape
    grid_m = m_pad // tile_m

    # VMEM footprint estimate (double-buffered streams + resident blocks).
    vmem_bytes = (
        2 * tile_m * n_pad * 2          # A tile (bf16), double-buffered
        + 2 * B * tile_m * 4            # p tile
        + 2 * tile_m * 4                # inv_row tile
        + 2 * B * n_pad * 4             # resident x
        + 2 * n_pad * 4                 # resident inv_col
        + 2 * B * n_pad * 4             # output
        + B * n_pad * 4                 # f32 accumulator scratch
    )
    vmem_limit = int(min(max(4 * vmem_bytes, 16 * 1024 * 1024),
                         48 * 1024 * 1024))

    cost = pl.CostEstimate(
        flops=4 * B * m_pad * n_pad,     # two (B,M)x(M,N)-class matmuls
        transcendentals=0,
        bytes_accessed=(a_bf16.size * a_bf16.dtype.itemsize
                        + x.size * 4 + p.size * 4
                        + inv_row.size * 4 + inv_col.size * 4
                        + B * n_pad * 4))

    return pl.pallas_call(
        _sart_kernel,
        out_shape=jax.ShapeDtypeStruct((B, n_pad), jnp.float32),
        grid_spec=pltpu.PrefetchScalarGridSpec(
            num_scalar_prefetch=0,
            grid=(grid_m,),
            in_specs=[
                pl.BlockSpec((B, n_pad), lambda k: (0, 0)),       # x (resident)
                pl.BlockSpec((B, tile_m), lambda k: (0, k)),      # p tile
                pl.BlockSpec((tile_m, n_pad), lambda k: (k, 0)),  # A tile
                pl.BlockSpec((1, tile_m), lambda k: (0, k)),      # inv_row tile
                pl.BlockSpec((1, n_pad), lambda k: (0, 0)),       # inv_col
            ],
            out_specs=pl.BlockSpec((B, n_pad), lambda k: (0, 0)),
            scratch_shapes=[pltpu.VMEM((B, n_pad), jnp.float32)],
        ),
        compiler_params=pltpu.CompilerParams(
            dimension_semantics=("arbitrary",),
            vmem_limit_bytes=vmem_limit),
        cost_estimate=cost,
    )(x, p, a_bf16, inv_row, inv_col)


def sart_layer(image, proj, A, *, tile_m=128):
    """Mirror of SARTlayer.forward(input, proj).

    image: (B, 1, H, W)             current reconstruction estimate (NCHW)
    proj:  (B, 1, n_angles, n_det)  measured sinogram (NCHW)
    A:     (n_angles * n_det, H*W)  system matrix
    """
    if image.shape[1] != 1 or proj.shape[1] != 1:
        raise NotImplementedError
    B, _, H, W = image.shape
    _, _, n_ang, n_det = proj.shape
    N = H * W
    M = n_ang * n_det

    x = image.reshape(B, N).astype(jnp.float32)
    p = proj.reshape(B, M).astype(jnp.float32)
    Af = A.astype(jnp.float32)

    # Normalizers precomputed once (A is constant across SART iterations).
    inv_row = (1.0 / (jnp.sum(Af, axis=1) + EPS))[None, :]   # (1, M)
    inv_col = (1.0 / (jnp.sum(Af, axis=0) + EPS))[None, :]   # (1, N)

    # Lane-align the ray axis (multiple of tile_m) and pixel axis (128).
    n_pad = _round_up(N, 128)
    m_pad = _round_up(M, tile_m)
    if n_pad != N:
        x = jnp.pad(x, ((0, 0), (0, n_pad - N)))
        Af = jnp.pad(Af, ((0, 0), (0, n_pad - N)))
        inv_col = jnp.pad(inv_col, ((0, 0), (0, n_pad - N)))
    if m_pad != M:
        p = jnp.pad(p, ((0, 0), (0, m_pad - M)))
        Af = jnp.pad(Af, ((0, m_pad - M), (0, 0)))
        inv_row = jnp.pad(inv_row, ((0, 0), (0, m_pad - M)))

    # Stream A in bf16 (SART tolerates a reduced-precision system matrix).
    a_bf16 = Af.astype(jnp.bfloat16)

    out = _sart_pallas(x, p, a_bf16, inv_row, inv_col, tile_m=tile_m)
    return out[:, :N].reshape(B, 1, H, W).astype(image.dtype)


def make_system_matrix(H, W, n_angles, n_det, dtype=jnp.float32):
    """Deterministic synthetic parallel-beam system matrix (M, N)."""
    cy = (H - 1) / 2.0
    cx = (W - 1) / 2.0
    ys = jnp.arange(H, dtype=jnp.float32) - cy          # (H,)
    xs = jnp.arange(W, dtype=jnp.float32) - cx          # (W,)
    yy = jnp.repeat(ys, W)                               # (N,) row-major
    xx = jnp.tile(xs, H)                                 # (N,)

    angles = jnp.arange(n_angles, dtype=jnp.float32) * (jnp.pi / n_angles)
    cos_a = jnp.cos(angles)[:, None]                     # (A, 1)
    sin_a = jnp.sin(angles)[:, None]                     # (A, 1)
    # projected coordinate of each pixel for each angle: (A, N)
    t = xx[None, :] * cos_a + yy[None, :] * sin_a

    det_pos = (jnp.arange(n_det, dtype=jnp.float32) - (n_det - 1) / 2.0) \
        * (max(H, W) / n_det)                            # (D,)
    sigma = max(H, W) / n_det                            # ray footprint width
    # Gaussian ray footprint weights: (A, D, N)
    d2 = (t[:, None, :] - det_pos[None, :, None]) ** 2
    A_mat = jnp.exp(-0.5 * d2 / (sigma ** 2))
    return A_mat.reshape(n_angles * n_det, H * W).astype(dtype)


def sart_reference(image, proj, A):
    """Pure-JAX reference (mirrors the kernel's bf16-A / f32-accum math)."""
    B, _, H, W = image.shape
    _, _, n_ang, n_det = proj.shape
    x = image.reshape(B, H * W).astype(jnp.float32)
    p = proj.reshape(B, n_ang * n_det).astype(jnp.float32)
    Af = A.astype(jnp.float32)
    inv_row = (1.0 / (jnp.sum(Af, axis=1) + EPS))[None, :]
    inv_col = (1.0 / (jnp.sum(Af, axis=0) + EPS))[None, :]
    Ab = Af.astype(jnp.bfloat16)
    p_hat = jax.lax.dot_general(
        x.astype(jnp.bfloat16), Ab, (((1,), (1,)), ((), ())),
        preferred_element_type=jnp.float32)
    resid = (p - p_hat) * inv_row
    bp = jnp.dot(resid.astype(jnp.bfloat16), Ab,
                 preferred_element_type=jnp.float32)
    x_new = x + LAMBDA * bp * inv_col
    return x_new.reshape(B, 1, H, W).astype(image.dtype)


if __name__ == "__main__":
    B, C, H, W = 2, 1, 16, 16
    n_angles, n_det = 16, 16          # M = 256 (lane-aligned), N = 256

    key = jax.random.PRNGKey(0)
    k_img, k_true = jax.random.split(key)

    # Initial image estimate and a "true" phantom to generate the sinogram.
    image = jax.random.uniform(k_img, (B, C, H, W), dtype=jnp.float32)
    phantom = jax.random.uniform(k_true, (B, C, H, W), dtype=jnp.float32)

    A = make_system_matrix(H, W, n_angles, n_det)        # (256, 256)

    # Measured projections p = A @ phantom (computed in plain JAX as setup).
    proj = (phantom.reshape(B, H * W) @ A.T).reshape(B, C, n_angles, n_det)

    out = sart_layer(image, proj, A)
    out = jax.block_until_ready(out)

    ref = sart_reference(image, proj, A)
    assert out.shape == (B, C, H, W)
    assert jnp.allclose(out, ref, atol=1e-3, rtol=1e-3), "mismatch vs reference"

    print("KERNEL_OK")
</pallas_src>

<mosaic_0001>
module attributes {stable_mosaic.version = 11 : i64} {
  func.func @_sart_kernel(%arg0: i32, %arg1: memref<2x256xf32, #tpu.memory_space<vmem>>, %arg2: memref<2x128xf32, #tpu.memory_space<vmem>>, %arg3: memref<128x256xbf16, #tpu.memory_space<vmem>>, %arg4: memref<1x128xf32, #tpu.memory_space<vmem>>, %arg5: memref<1x256xf32, #tpu.memory_space<vmem>>, %arg6: memref<2x256xf32, #tpu.memory_space<vmem>>, %arg7: memref<2x256xf32, #tpu.memory_space<vmem>>) attributes {dimension_semantics = [#tpu.dimension_semantics<arbitrary>], iteration_bounds = array<i64: 2>, scalar_prefetch = 0 : i64, scratch_operands = 1 : i64, tpu.core_type = #tpu.core_type<tc>, window_params = [{pipeline_mode = #tpu.pipeline_mode<synchronous>, transform_indices = @transform_0, window_bounds = array<i64: 2, 256>}, {transform_indices = @transform_1, window_bounds = array<i64: 2, 128>}, {transform_indices = @transform_2, window_bounds = array<i64: 128, 256>}, {transform_indices = @transform_3, window_bounds = array<i64: 1, 128>}, {pipeline_mode = #tpu.pipeline_mode<synchronous>, transform_indices = @transform_4, window_bounds = array<i64: 1, 256>}, {pipeline_mode = #tpu.pipeline_mode<synchronous>, transform_indices = @transform_5, window_bounds = array<i64: 2, 256>}]} {
    %c0_i32 = arith.constant 0 : i32
    %0 = arith.cmpi eq, %arg0, %c0_i32 : i32
    %1 = arith.extui %0 : i1 to i32
    %c0_i32_0 = arith.constant 0 : i32
    %2 = arith.cmpi ne, %1, %c0_i32_0 : i32
    scf.if %2 {
      %cst_14 = arith.constant 0.000000e+00 : f32
      %20 = vector.broadcast %cst_14 : f32 to vector<2x256xf32>
      %c0_15 = arith.constant 0 : index
      %c0_16 = arith.constant 0 : index
      %21 = vector.load %arg7[%c0_15, %c0_16] : memref<2x256xf32, #tpu.memory_space<vmem>>, vector<2x256xf32>
      tpu.vector_store %arg7[%c0_15, %c0_16], %20 {strides = array<i32>} : memref<2x256xf32, #tpu.memory_space<vmem>>, vector<2x256xf32>,
    } else {
    }
    %c0 = arith.constant 0 : index
    %c0_1 = arith.constant 0 : index
    %3 = vector.load %arg1[%c0, %c0_1] : memref<2x256xf32, #tpu.memory_space<vmem>>, vector<2x256xf32>
    %c0_2 = arith.constant 0 : index
    %c0_3 = arith.constant 0 : index
    %4 = vector.load %arg3[%c0_2, %c0_3] : memref<128x256xbf16, #tpu.memory_space<vmem>>, vector<128x256xbf16>
    %5 = arith.truncf %3 : vector<2x256xf32> to vector<2x256xbf16>
    %cst = arith.constant dense<0.000000e+00> : vector<2x128xf32>
    %6 = tpu.matmul %5, %4, %cst {dimension_numbers = #tpu.dot_dimension_numbers<[1], [1], [0], [0], [0, 0, 1, 0], [], []>} : vector<2x256xbf16>, vector<128x256xbf16>, vector<2x128xf32> -> vector<2x128xf32>
    %c0_4 = arith.constant 0 : index
    %c0_5 = arith.constant 0 : index
    %7 = vector.load %arg2[%c0_4, %c0_5] : memref<2x128xf32, #tpu.memory_space<vmem>>, vector<2x128xf32>
    %8 = arith.subf %7, %6 : vector<2x128xf32>
    %c0_6 = arith.constant 0 : index
    %c0_7 = arith.constant 0 : index
    %9 = vector.load %arg4[%c0_6, %c0_7] : memref<1x128xf32, #tpu.memory_space<vmem>>, vector<1x128xf32>
    %10 = vector.broadcast %9 : vector<1x128xf32> to vector<2x128xf32>
    %11 = arith.mulf %8, %10 : vector<2x128xf32>
    %c0_8 = arith.constant 0 : index
    %c0_9 = arith.constant 0 : index
    %12 = vector.load %arg7[%c0_8, %c0_9] : memref<2x256xf32, #tpu.memory_space<vmem>>, vector<2x256xf32>
    %13 = arith.truncf %11 : vector<2x128xf32> to vector<2x128xbf16>
    %cst_10 = arith.constant dense<0.000000e+00> : vector<2x256xf32>
    %14 = tpu.matmul %13, %4, %cst_10 {dimension_numbers = #tpu.dot_dimension_numbers<[1], [0], [0], [1], [0, 0, 1, 1], [], []>} : vector<2x128xbf16>, vector<128x256xbf16>, vector<2x256xf32> -> vector<2x256xf32>
    %15 = arith.addf %12, %14 : vector<2x256xf32>
    %c0_11 = arith.constant 0 : index
    %c0_12 = arith.constant 0 : index
    %16 = vector.load %arg7[%c0_11, %c0_12] : memref<2x256xf32, #tpu.memory_space<vmem>>, vector<2x256xf32>
    tpu.vector_store %arg7[%c0_11, %c0_12], %15 {strides = array<i32>} : memref<2x256xf32, #tpu.memory_space<vmem>>, vector<2x256xf32>,
    %c1_i32 = arith.constant 1 : i32
    %17 = arith.cmpi eq, %arg0, %c1_i32 : i32
    %18 = arith.extui %17 : i1 to i32
    %c0_i32_13 = arith.constant 0 : i32
    %19 = arith.cmpi ne, %18, %c0_i32_13 : i32
    scf.if %19 {
      %c0_14 = arith.constant 0 : index
      %c0_15 = arith.constant 0 : index
      %20 = vector.load %arg7[%c0_14, %c0_15] : memref<2x256xf32, #tpu.memory_space<vmem>>, vector<2x256xf32>
      %cst_16 = arith.constant 1.000000e+00 : f32
      %21 = vector.broadcast %cst_16 : f32 to vector<2x256xf32>
      %22 = arith.mulf %21, %20 : vector<2x256xf32>
      %c0_17 = arith.constant 0 : index
      %c0_18 = arith.constant 0 : index
      %23 = vector.load %arg5[%c0_17, %c0_18] : memref<1x256xf32, #tpu.memory_space<vmem>>, vector<1x256xf32>
      %24 = vector.broadcast %23 : vector<1x256xf32> to vector<2x256xf32>
      %25 = arith.mulf %22, %24 : vector<2x256xf32>
      %26 = arith.addf %3, %25 : vector<2x256xf32>
      %c0_19 = arith.constant 0 : index
      %c0_20 = arith.constant 0 : index
      %27 = vector.load %arg6[%c0_19, %c0_20] : memref<2x256xf32, #tpu.memory_space<vmem>>, vector<2x256xf32>
      tpu.vector_store %arg6[%c0_19, %c0_20], %26 {strides = array<i32>} : memref<2x256xf32, #tpu.memory_space<vmem>>, vector<2x256xf32>,
    } else {
    }
    return
  }
  func.func @transform_0(%arg0: i32) -> (i32, i32) {
    %c0_i32 = arith.constant 0 : i32
    %c0_i32_0 = arith.constant 0 : i32
    %c0_i32_1 = arith.constant 0 : i32
    return %c0_i32, %c0_i32_0 : i32, i32
  }
  func.func @transform_1(%arg0: i32) -> (i32, i32) {
    %c0_i32 = arith.constant 0 : i32
    %c0_i32_0 = arith.constant 0 : i32
    return %c0_i32, %arg0 : i32, i32
  }
  func.func @transform_2(%arg0: i32) -> (i32, i32) {
    %c0_i32 = arith.constant 0 : i32
    %c0_i32_0 = arith.constant 0 : i32
    return %arg0, %c0_i32 : i32, i32
  }
  func.func @transform_3(%arg0: i32) -> (i32, i32) {
    %c0_i32 = arith.constant 0 : i32
    %c0_i32_0 = arith.constant 0 : i32
    return %c0_i32, %arg0 : i32, i32
  }
  func.func @transform_4(%arg0: i32) -> (i32, i32) {
    %c0_i32 = arith.constant 0 : i32
    %c0_i32_0 = arith.constant 0 : i32
    %c0_i32_1 = arith.constant 0 : i32
    return %c0_i32, %c0_i32_0 : i32, i32
  }
  func.func @transform_5(%arg0: i32) -> (i32, i32) {
    %c0_i32 = arith.constant 0 : i32
    %c0_i32_0 = arith.constant 0 : i32
    %c0_i32_1 = arith.constant 0 : i32
    return %c0_i32, %c0_i32_0 : i32, i32
  }
}

</mosaic_0001>

<bundles_post_ra>
// kernel: _sart_pallas.1
= control target key start
LH: loop header
LB: loop body
LE: loop exit
PB: predicated region body
PF: predicated region fallthrough
CT: control target
= control target key end

     0   :  { %10 = vsyncpa [#allocation4], 0  ;;  %s1193_s0 = inlined_call_operand.hbm [shape: f32[2,256], index: 0, kind: input, shape index: {}]   ;;  %s1194_s1 = inlined_call_operand.hbm [shape: f32[2,256], index: 1, kind: input, shape index: {}]   ;;  %s1195_s2 = inlined_call_operand.hbm [shape: bf16[256,256], index: 2, kind: input, shape index: {}]   ;;  %s1196_s3 = inlined_call_operand.vmem [shape: f32[1,256], index: 3, kind: input, shape index: {}]   ;;  %s1197_s4 = inlined_call_operand.vmem [shape: f32[1,256], index: 4, kind: input, shape index: {}]   ;;  %s1198_s5 = inlined_call_operand.hbm [shape: f32[2,256], index: 5, kind: output, shape index: {}]  }
   0x1   :  { %11 = vsyncpa [#allocation7], 0 }
   0x2   :  { %13 = vsyncpa [#allocation7 + $0x1], 0 }
   0x3   :  { %14 = vsyncpa [#allocation5], 0  ;;  %s960_s18 = smov 0   ;;  %s962_s19 = smov 0  }
   0x4   :  { %s964_s20 = smov 0   ;;  %s966_s21 = smov 0  }
   0x5 LB: > { %s981_s22 = sadd.s32 1, %s919_s21   ;;  %s48_s23 = sadd.s32 1, %s915_s20  ;;  %s919_s21 = sphi %s966_s21, %s1214_s21   ;;  %s915_s20 = sphi %s964_s20, %s1213_s20   ;;  %s911_s19 = sphi %s962_s19, %s1212_s19   ;;  %s907_s18 = sphi %s960_s18, %s1211_s18  }
   0x6   : > { %s45_s24 = ssub.s32 %s919_s21, %s981_s22  ;;  %p55_p0 = scmp.ne.s32.totalorder %s915_s20, %s911_s19 }
   0x7   : > { %p46_p1 = scmp.eq.s32.totalorder %s45_s24, 0  ;;  %p56_p2 = scmp.eq.s32.totalorder %s919_s21, 0 }
   0x8   : > { %p704_p3 = scmp.lt.s32.totalorder %s919_s21, 2  ;;  %s193_s26 = sand.u32 1, %s919_s21  }
   0x9   : > { %s991_s25 = scalar_select %p46_p1, %s915_s20, %s48_s23  }
   0xa   : > { %p57_p4 = por %p56_p2, %p55_p0  ;;  %s195_s27 = sand.u32 1, %s915_s20  }
   0xb   : > { %s645_s28 = sshll.u32 %s195_s27, 1  ;;  %s646_s29 = sshll.u32 %s919_s21, 5 }
   0xc   : > { %s999_s7 = scalar_lea.hbm %s1194_s1, %s646_s29  ;;  %s197_s8 = scalar_lea.vmem [#allocation6], %s645_s28 }
   0xd   : > { %s204_s9 = sshll.u32 %s197_s8, 4  ;;  %p1001_p5 = pnand %p704_p3, %p57_p4  ;;  %s205_s9 = int_to_ptr.vmem [resolvable:$true] %s204_s9 }
   0xe   : > { %s647_s11 = sshll.u32 %s195_s27, 7  ;;  %s1005_s12 = scalar_lea.sflag [#allocation7], %s193_s26 }
   0xf   : > { %s771_s13 = scalar_lea.hbm %s999_s7, 32  ;;  %p773_p7 = pneg %p1001_p5 }
  0x10   : > { %p772_p6 = scmp.ne.s32.totalorder %s999_s7, %s771_s13  ;;  %s776_s16 = scalar_lea.hbm %s1194_s1, 64 }
  0x11   : > { %p777_p10 = scmp.lt.s32.totalorder %s999_s7, %s1194_s1  ;;  %p778_p11 = scmp.lt.s32.totalorder %s776_s16, %s771_s13 }
  0x12   : > { %p774_p8 = pnand %p773_p7, %p772_p6 }
  0x13   : > { %p779_p12 = por %p778_p11, %p777_p10 }
  0x14   : > { %p775_p9 = pneg %p774_p8 }
  0x16   : > { %p780_p13 = pnand %p779_p12, %p775_p9 }
  0x18   : > { %783 = shalt.err (!%p780_p13)
}
  0x19   : > { %s784_s24 = scalar_lea.vmem %s205_s9, 32  ;;  %s921_s26 = smov [#allocation6]  }
  0x1a   : > { %p785_p0 = scmp.ne.s32.totalorder %s205_s9, %s784_s24  ;;  %s789_s27 = sshll.u32 %s921_s26, 4  ;;  %s790_s27 = int_to_ptr.vmem [resolvable:$false] %s789_s27 }
  0x1b   : > { %s791_s28 = scalar_lea.vmem %s790_s27, 64  ;;  %p792_p3 = scmp.lt.s32.totalorder %s205_s9, %s790_s27 }
  0x1c   : > { %p787_p1 = pnand %p785_p0, %p773_p7  ;;  %p793_p4 = scmp.lt.s32.totalorder %s791_s28, %s784_s24 }
  0x1e   : > { %p788_p2 = pneg %p787_p1  ;;  %p794_p6 = por %p793_p4, %p792_p3 }
  0x20   : > { %p795_p8 = pnand %p794_p6, %p788_p2 }
  0x22   : > { %798 = shalt.err (!%p795_p8)
}
  0x23   : > { %699 = dma.hbm_to_vmem [thread:$0]  (!%p1001_p5), %s999_s7, 32, %s205_s9, %s1005_s12  }
  0x24   : > { %s215_s29 = scalar_lea.vmem [#allocation8], %s647_s11  ;;  %s1029_s6 = sadd.s32 4294967295, %s919_s21  }
  0x25   : > { %s223_s30 = sshll.u32 %s215_s29, 4  ;;  %p61_p9 = scmp.ne.s32.totalorder %s911_s19, %s907_s18  ;;  %s1043_s30 = int_to_ptr.vmem [resolvable:$true] %s223_s30 }
  0x26   : > { %p1199_p10 = scmp.eq.s32.totalorder %s1029_s6, 0  ;;  %p642_p11 = scmp.ge.s32.totalorder %s919_s21, 1 }
  0x27   : > { %p166_p12 = scmp.lt.s32.totalorder %s919_s21, 3  ;;  %s922_s9 = smov [#allocation3]  }
  0x28   : > { %p1039_p0 = por %p1199_p10, %p61_p9  ;;  %s179_s11 = sshll.u32 %s922_s9, 4  ;;  %s1057_s11 = int_to_ptr.vmem [resolvable:$true] %s179_s11 }
  0x29   : > { %p1045_p1 = pnand %p642_p11, %p166_p12  ;;  %s679_s18 = sshll.u32 %s919_s21, 11 }
  0x2a   : > { %s1203_s8 = scalar_select %p1039_p0, 1, 0 }
  0x2b   : > { %s1204_s7 = scalar_select %p1045_p1, 1, 0 }
  0x2c   : > { %p692_p2 = pneg %p1045_p1  ;;  %s1055_s15 = scalar_lea.hbm %s1195_s2, %s679_s18 }
  0x2d   : > { %s799_s17 = scalar_lea.hbm %s1055_s15, 2048  ;;  %s804_s24 = scalar_lea.hbm %s1195_s2, 4096 }
  0x2e   : > { %p1061_p3 = pnand %p692_p2, %p1199_p10  ;;  %p800_p4 = scmp.ne.s32.totalorder %s1055_s15, %s799_s17 }
  0x2f   : > { %p805_p9 = scmp.lt.s32.totalorder %s1055_s15, %s1195_s2  ;;  %p806_p11 = scmp.lt.s32.totalorder %s804_s24, %s799_s17 }
  0x30   : > { %p802_p6 = pnand %p800_p4, %p773_p7 }
  0x31   : > { %p807_p12 = por %p806_p11, %p805_p9 }
  0x32   : > { %p803_p8 = pneg %p802_p6 }
  0x34   : > { %p808_p2 = pnand %p807_p12, %p803_p8 }
  0x36   : > { %811 = shalt.err (!%p808_p2)
}
  0x37   : > { %s812_s28 = scalar_lea.vmem %s1043_s30, 2048  ;;  %s923_s29 = smov [#allocation8]  }
  0x38   : > { %p813_p13 = scmp.ne.s32.totalorder %s1043_s30, %s812_s28  ;;  %s817_s9 = sshll.u32 %s923_s29, 4  ;;  %s818_s9 = int_to_ptr.vmem [resolvable:$false] %s817_s9 }
  0x39   : > { %s819_s18 = scalar_lea.vmem %s818_s9, 4096  ;;  %p820_p10 = scmp.lt.s32.totalorder %s1043_s30, %s818_s9 }
  0x3a   : > { %p815_p4 = pnand %p813_p13, %p773_p7  ;;  %p821_p0 = scmp.lt.s32.totalorder %s819_s18, %s812_s28 }
  0x3c   : > { %p816_p6 = pneg %p815_p4  ;;  %p822_p1 = por %p821_p0, %p820_p10 }
  0x3e   : > { %p823_p9 = pnand %p822_p1, %p816_p6 }
  0x40   : > { %826 = shalt.err (!%p823_p9)
}
  0x41   : > { %s924_s13 = smov 128   ;;  %s925_s14 = smov 8  }
  0x42   : > { %702 = dma.hbm_to_vmem [thread:$0]  (!%p1001_p5), %s1055_s15, 2048, %s1043_s30, %s1005_s12, %s924_s13, %s924_s13, %s925_s14  }
  0x43   : > { %p829_p7 = pneg %p1061_p3  ;;  %s838_s17 = scalar_lea.vmem %s1057_s11, 64 }
  0x44   : > { %p839_p13 = scmp.ne.s32.totalorder %s1057_s11, %s838_s17  ;;  %p846_p0 = scmp.lt.s32.totalorder %s1057_s11, %s1057_s11 }
  0x45   : > { %p847_p1 = scmp.lt.s32.totalorder %s838_s17, %s838_s17 }
  0x46   : > { %p841_p8 = pnand %p839_p13, %p829_p7 }
  0x47   : > { %p848_p11 = por %p847_p1, %p846_p0 }
  0x48   : > { %p842_p10 = pneg %p841_p8 }
  0x4a   : > { %p849_p12 = pnand %p848_p11, %p842_p10 }
  0x4c   : > { %852 = shalt.err (!%p849_p12)
}
  0x4d   : > { %695 = dma.hbm_to_vmem [thread:$0]  (!%p1061_p3), %s1193_s0, 64, %s1057_s11, [#allocation4]  }
  0x4e   : > { %p1206_p5 = scmp.ne.s32.totalorder %s1204_s7, 0 }
  0x4f   : > { %p1207_p2 = scmp.eq.s32.totalorder (!%p1206_p5), %s1029_s6, 0 }
  0x50   : > { %241 = sbr.rel (%p1206_p5) target bundleno = 595 (0x253), region = 40 }
  0x55   : > { %894 = dma.done.wait (%p1207_p2), [#allocation4], 64   ;;  %p1208_p4 = pmov %p1207_p2 }
  0x56   : > { %s247_s10 = sand.u32 1, %s1029_s6   ;;  %s249_s12 = sand.u32 1, %s911_s19  }
  0x57   : > { %896 = vsyncadd (%p1208_p4), [#allocation4], 4294967232  ;;  %s1108_s30 = sshll.u32 %s249_s12, 1  ;;  %s248_s15 = scalar_lea.sflag [#allocation7], %s247_s10 }
  0x58   : > { %s251_s16 = scalar_lea.vmem [#allocation6], %s1108_s30  ;;  %p1209_p3 = scmp.ne.s32.totalorder %s1203_s8, 0 }
  0x5a   : > { %898 = dma.done.wait (%p1209_p3), %s248_s15, 2080  }
  0x5b   : > { %900 = vsyncadd (%p1209_p3), %s248_s15, 4294965216  ;;  %s654_s7 = sshll.u32 %s249_s12, 7  ;;  %p291_p6 = scmp.lt.s32.totalorder %s1029_s6, 1 }
  0x5c   : > { %s1123_s28 = scalar_lea.vmem [#allocation8], %s654_s7  ;;  %p1210_p9 = scmp.ne.s32.totalorder %s1029_s6, 0 }
  0x5d   : > { %s1117_s11 = scalar_select %p291_p6, %s1029_s6, 1 }
  0x5e   : > { %298 = sbr.rel (%p1210_p9) target bundleno = 101 (0x65), region = 56 }
  0x5f   : > { %s293_s27 = scalar_lea.vmem %s1196_s3, %s1117_s11 }
  0x63   : > { %v926_v0 = vmov 0.0  }
  0x64   : > { %299 = vst [vmem:[#allocation2] sm:$0xf] %v926_v0 }
  0x65 PF: > { %v747_v1 = vld [vmem:[%s1123_s28 + $0x74] ss:$8 sps:$4 sm:$0xff]   ;;  %v321_v2 = vlaneseq  ;;  %v749_v3 = vld [vmem:[%s1123_s28 + $0x70] ss:$8 sps:$4 sm:$0xff]   ;;  %v927_v4 = vmov 1983009808  }
  0x66   : > { %v319_v5 = vunpack.c.l.s4 %v927_v4  ;;  %410 = vmatprep.subr.bf16.mxu0 %v747_v1  ;;  %v750_v6 = vld [vmem:[%s1123_s28 + $0x64] ss:$8 sps:$4 sm:$0xff]   ;;  %462 = vmatprep.subr.bf16.mxu1 %v747_v1  ;;  %v752_v9 = vld [vmem:[%s1123_s28 + $0x60] ss:$8 sps:$4 sm:$0xff]   ;;  %v753_v10 = vld [vmem:[%s1123_s28 + $0x54] ss:$8 sps:$4 sm:$0xff]  }
  0x67   : > { %411 = vmatpush1.bf16.xpose.msra.mxu0 %v749_v3  ;;  %v1130_v8 = vshrl.u32 %v321_v2, 7  ;;  %463 = vmatpush1.bf16.msra.mxu1 %v749_v3  ;;  %v755_v12 = vld [vmem:[%s1123_s28 + $0x50] ss:$8 sps:$4 sm:$0xff]   ;;  %v756_v13 = vld [vmem:[%s1123_s28 + $0x44] ss:$8 sps:$4 sm:$0xff]   ;;  %v928_v28 = vmov 0  }
  0x68   : > { %v320_v7 = vunpack.c.0.s8 %v319_v5  ;;  %412 = vmatprep.subr.bf16.mxu0 %v750_v6  ;;  %464 = vmatprep.subr.bf16.mxu1 %v750_v6  ;;  %v1139_v14 = vld [vmem:[#allocation3] sm:$0xf]  ;;  %v758_v16 = vld [vmem:[%s1123_s28 + $0x40] ss:$8 sps:$4 sm:$0xff]   ;;  %v759_v18 = vld [vmem:[%s1123_s28 + $0x34] ss:$8 sps:$4 sm:$0xff]  }
  0x69   : > { %v761_v20 = vld [vmem:[%s1123_s28 + $0x30] ss:$8 sps:$4 sm:$0xff]   ;;  %v762_v21 = vld [vmem:[%s1123_s28 + $0x24] ss:$8 sps:$4 sm:$0xff]   ;;  %v764_v22 = vld [vmem:[%s1123_s28 + $0x20] ss:$8 sps:$4 sm:$0xff]   ;;  %494 = vmatprep.mubr.bf16.mxu1 %v928_v28 }
  0x6a   : > { %v1135_v11 = vsub.s32 %v320_v7, %v1130_v8  ;;  %v765_v23 = vld [vmem:[%s1123_s28 + $0x14] ss:$8 sps:$4 sm:$0xff]   ;;  %v767_v24 = vld [vmem:[%s1123_s28 + $0x10] ss:$8 sps:$4 sm:$0xff]   ;;  %v768_v25 = vld [vmem:[%s1123_s28 + $0x4] ss:$8 sps:$4 sm:$0xff]  }
  0x6b   : > { %465 = vmatpush1.bf16.msra.mxu1 %v752_v9  ;;  %v770_v26 = vld [vmem:[%s1123_s28] ss:$8 sps:$4 sm:$0xff]   ;;  %v450_v29 = vld [vmem:[%s251_s16] sm:$0x3]  ;;  %v672_v31 = vld [vmem:[%s293_s27] ss:$0 sm:$0xff] }
  0x6c   : > { %466 = vmatprep.subr.bf16.mxu1 %v753_v10  ;;  %v324_v15 = vrot.slane %v1139_v14, %v1135_v11  ;;  %v460_v41 = vld [vmem:[#allocation2] sm:$0xf]  ;;  %p673_p7 = scmp.ne.s32.totalorder %s1029_s6, 1 }
  0x6e   : > { %v325_v17 = vcombine.high %v324_v15, %v324_v15  ;;  %v328_v27 = vpack.c.bf16 %v324_v15, %v324_v15 }
  0x6f   : > { %413 = vmatpush1.bf16.xpose.msra.mxu0 %v752_v9  ;;  %467 = vmatpush1.bf16.msra.mxu1 %v755_v12 }
  0x70   : > { %414 = vmatprep.subr.bf16.mxu0 %v753_v10  ;;  %468 = vmatprep.subr.bf16.mxu1 %v756_v13  ;;  %v329_v19 = vpack.c.bf16 %v325_v17, %v325_v17 }
  0x72   : > { %442 = vmatprep.mubr.bf16.mxu0 %v329_v19 }
  0x73   : > { %469 = vmatpush1.bf16.msra.mxu1 %v758_v16 }
  0x74   : > { %470 = vmatprep.subr.bf16.mxu1 %v759_v18 }
  0x77   : > { %415 = vmatpush1.bf16.xpose.msra.mxu0 %v755_v12  ;;  %471 = vmatpush1.bf16.msra.mxu1 %v761_v20 }
  0x78   : > { %416 = vmatprep.subr.bf16.mxu0 %v756_v13  ;;  %472 = vmatprep.subr.bf16.mxu1 %v762_v21 }
  0x7b   : > { %473 = vmatpush1.bf16.msra.mxu1 %v764_v22 }
  0x7c   : > { %474 = vmatprep.subr.bf16.mxu1 %v765_v23 }
  0x7f   : > { %417 = vmatpush1.bf16.xpose.msra.mxu0 %v758_v16  ;;  %475 = vmatpush1.bf16.msra.mxu1 %v767_v24 }
  0x80   : > { %418 = vmatprep.subr.bf16.mxu0 %v759_v18  ;;  %476 = vmatprep.subr.bf16.mxu1 %v768_v25 }
  0x83   : > { %477 = vmatpush1.bf16.msra.mxu1 %v770_v26 }
  0x87   : > { %419 = vmatpush1.bf16.xpose.msra.mxu0 %v761_v20 }
  0x88   : > { %420 = vmatprep.subr.bf16.mxu0 %v762_v21 }
  0x8f   : > { %421 = vmatpush1.bf16.xpose.msra.mxu0 %v764_v22 }
  0x90   : > { %422 = vmatprep.subr.bf16.mxu0 %v765_v23 }
  0x97   : > { %423 = vmatpush1.bf16.xpose.msra.mxu0 %v767_v24 }
  0x98   : > { %424 = vmatprep.subr.bf16.mxu0 %v768_v25 }
  0x9f   : > { %425 = vmatpush1.bf16.xpose.msra.mxu0 %v770_v26 }
  0xa6   : > { %443 = vmatmul.mubr.bf16.vlgmr.msra.gmra.mxu0 %v328_v27 }
 0x166   : > { %v444_v30 = vpop.f32.mrf.mxu0 }
 0x167   : > { %v451_v32 = vsub.f32 %v450_v29, %v444_v30 }
 0x168   : > { %v446_v33 = vpop.f32.mrf.mxu0 }
 0x169   : > { %v459_v34 = vmul.f32 %v672_v31, %v451_v32 }
 0x16a   : > { %v447_v35 = vpop.f32.mrf.mxu0 }
 0x16b   : > { %v461_v36 = vpack.c.bf16 %v459_v34, %v459_v34 }
 0x16c   : > { %v448_v37 = vpop.f32.mrf.mxu0 }
 0x16d   : > { %495 = vmatmul.mubr.bf16.vlgmr.msra.gmra.mxu1 %v461_v36 }
 0x22d   : > { %v496_v38 = vpop.f32.mrf.mxu1 }
 0x22f   : > { %v498_v39 = vpop.f32.mrf.mxu1 }
 0x230   : > { %v505_v40 = vcombine.low %v496_v38, %v498_v39 }
 0x231   : > { %v500_v42 = vpop.f32.mrf.mxu1 }
 0x232   : > { %v512_v43 = vrot.slane %v505_v40, %v1135_v11  ;;  %519 = sbr.rel (%p673_p7) target bundleno = 580 (0x244), region = 60 }
 0x233   : > { %v501_v44 = vpop.f32.mrf.mxu1 }
 0x234   : > { %v514_v45 = vadd.f32 %v512_v43, %v460_v41 }
 0x236   : > { %515 = vst [vmem:[#allocation2] sm:$0xf] %v514_v45 }
 0x237   : > { %v521_v46 = vld [vmem:[%s1197_s4] sm:$0x3]  ;;  %v525_v47 = vsub.s32 0, %v1130_v8  ;;  %v529_v48 = vsub.s32 1, %v1130_v8 }
 0x239   : > { %v526_v49 = vrot.slane %v521_v46, %v525_v47  ;;  %v530_v50 = vrot.slane %v521_v46, %v529_v48 }
 0x23b   : > { %v531_v51 = vcombine.low %v526_v49, %v530_v50 }
 0x23d   : > { %v520_v52 = vld [vmem:[#allocation2] sm:$0xf]  ;;  %v538_v53 = vrot.slane %v531_v51, %v1135_v11 }
 0x23f   : > { %v540_v54 = vmul.f32 %v538_v53, %v520_v52 }
 0x241   : > { %v541_v55 = vadd.f32 %v540_v54, %v1139_v14 }
 0x243   : > { %542 = vst [vmem:[#allocation9] sm:$0xf] %v541_v55 }
 0x244 PF: > { %p706_p13 = scmp.eq.s32.totalorder %s1029_s6, 1  ;;  %s929_s13 = smov [#allocation9]  }
 0x245   : > { %s550_s14 = sshll.u32 %s929_s13, 4  ;;  %s551_s14 = int_to_ptr.vmem [resolvable:$true] %s550_s14 }
 0x246   : > { %s853_s17 = scalar_lea.vmem %s551_s14, 64  ;;  %p860_p1 = scmp.lt.s32.totalorder %s551_s14, %s551_s14 }
 0x247   : > { %p854_p8 = scmp.ne.s32.totalorder %s551_s14, %s853_s17  ;;  %p861_p11 = scmp.lt.s32.totalorder %s853_s17, %s853_s17 }
 0x249   : > { %p855_p10 = pnand %p854_p8, %p706_p13  ;;  %p862_p12 = por %p861_p11, %p860_p1 }
 0x24b   : > { %p856_p0 = pneg %p855_p10 }
 0x24d   : > { %p863_p5 = pnand %p862_p12, %p856_p0 }
 0x24f   : > { %866 = shalt.err (!%p863_p5)
}
 0x250   : > { %689 = dma.vmem_to_hbm [thread:$0]  (%p706_p13), %s551_s14, 64, %s1198_s5, [#allocation5]  }
 0x251   : > { %902 = dma.done.wait (%p706_p13), [#allocation5], 64  }
 0x252   : > { %904 = vsyncadd (%p706_p13), [#allocation5], 4294967232 }
 0x253 PF: > { %p17_p2 = scmp.ge.s32.totalorder %s981_s22, 4   ;;  %s1211_s18 = smov %s911_s19 }
 0x254   : > { %s1212_s19 = smov %s915_s20  ;;  %s1213_s20 = smov %s991_s25 }
 0x255   : > { %s1214_s21 = smov %s981_s22  ;;  %19 = sbr.rel (!%p17_p2) target bundleno = 5 (0x5), region = 104 }
 0x25a   :  { %563 = vsyncpa [#allocation4], 1 }
 0x25b   :  { %565 = vsyncpa [#allocation4 + $0x1], 1 }
 0x25c   :  { %566 = vsyncpa [#allocation7], 1 }
 0x25d   :  { %568 = vsyncpa [#allocation7 + $0x1], 1 }
 0x25e   :  { %569 = vsyncpa [#allocation5], 1 }
 0x25f   :  { %571 = vsyncpa [#allocation5 + $0x1], 1 }

</bundles_post_ra>
